<compile_context>
chip_gen: v5e
topology: v5e:2x2
jax: 0.10.0
libtpu: 0.0.40
codegen_flags: <defaults>
</compile_context>

<pallas_src>
import functools

import jax
import jax.numpy as jnp
import numpy as np
from jax.experimental import pallas as pl
from jax.experimental.pallas import tpu as pltpu


def _aggregator_kernel(self_ref, nvec_ref, nrel_ref, user_ref, w_ref, b_ref,
                       out_ref, *, aggregator, act, dim, n_neighbors):
    """One (batch, N-tile) grid step.

    Block views:
      self_ref (1, TN, D)     nvec_ref / nrel_ref (1, TN, K*D)
      user_ref (1, 1, D)      w_ref (d_in, D)     b_ref (1, D)
      out_ref  (1, TN, D)
    """
    f32 = jnp.float32
    D, K = dim, n_neighbors
    hp = jax.lax.Precision.HIGHEST  # full-f32 MXU passes

    selfv = self_ref[0].astype(f32)        # (TN, D)
    vec = nvec_ref[0].astype(f32)          # (TN, K*D)
    rel = nrel_ref[0].astype(f32)          # (TN, K*D)
    user = user_ref[0].astype(f32)         # (1, D), broadcasts over rows

    # Per-neighbor attention scores <user, relation_k>: static lane-slices of
    # the folded K*D axis + cross-lane reduce.  Exact f32; K is small/static.
    scores = [jnp.sum(rel[:, k * D:(k + 1) * D] * user, axis=-1, keepdims=True)
              for k in range(K)]                                  # K x (TN,1)

    # Softmax over the K neighbors (matches F.softmax(dim=-1)), exact divide.
    m = scores[0]
    for k in range(1, K):
        m = jnp.maximum(m, scores[k])
    exps = [jnp.exp(s - m) for s in scores]
    denom = exps[0]
    for k in range(1, K):
        denom = denom + exps[k]
    inv = 1.0 / denom                                             # (TN, 1)

    # Weighted neighbor sum: agg = sum_k p_k * neighbor_k  -> (TN, D)
    agg = (exps[0] * inv) * vec[:, 0:D]
    for k in range(1, K):
        agg = agg + (exps[k] * inv) * vec[:, k * D:(k + 1) * D]

    # Linear + activation.  'concat' uses split weights: no concat/relayout.
    w = w_ref[...].astype(f32)
    if aggregator == 'sum':
        out = jnp.dot(selfv + agg, w, preferred_element_type=f32, precision=hp)
    elif aggregator == 'concat':
        out = (jnp.dot(selfv, w[:D, :], preferred_element_type=f32, precision=hp)
               + jnp.dot(agg, w[D:, :], preferred_element_type=f32, precision=hp))
    else:  # 'neighbor'
        out = jnp.dot(agg, w, preferred_element_type=f32, precision=hp)

    out_ref[0] = act(out + b_ref[...].astype(f32)).astype(out_ref.dtype)


def aggregator_forward(self_vectors, neighbor_vectors, neighbor_relations,
                       user_embeddings, weight, bias,
                       aggregator='sum', act=jax.nn.relu, row_tile=2048):
    B, N, K, D = neighbor_vectors.shape
    d_in, d_out = weight.shape
    assert d_out == D and self_vectors.shape == (B, N, D)
    assert user_embeddings.shape == (B, D)

    # Fold (K, D) -> one lane axis (contiguous trailing dims: free reshape).
    # No jnp.pad and no materialized per-row user broadcast: the big tensors
    # stream straight from HBM into the kernel.
    nvec = neighbor_vectors.reshape(B, N, K * D)
    nrel = neighbor_relations.reshape(B, N, K * D)
    user3 = user_embeddings.reshape(B, 1, D)
    bias2 = bias.reshape(1, D)

    # N-tile: as large as possible (amortize the ~0.35us/step grid overhead)
    # but keep >= ~4 total grid steps when the shape allows, so v7x can shard
    # the parallel axes over its 2 TensorCores.  VMEM stays a few MiB.
    row_tile = max(8, (int(row_tile) // 8) * 8)
    target_steps = 4
    if B < target_steps and N > 8:
        per_batch = -(-target_steps // B)
        cap = max(8, ((-(-N // per_batch) + 7) // 8) * 8)
        row_tile = min(row_tile, cap)
    tn = N if N <= row_tile else row_tile
    grid = (B, pl.cdiv(N, tn))     # ragged tail (if any) masked by Pallas

    kernel = functools.partial(_aggregator_kernel, aggregator=aggregator,
                               act=act, dim=D, n_neighbors=K)

    # TODO(synk): if the model's precision budget allows, feed nvec/nrel in
    # bf16 from upstream and upcast in-kernel (halves ~73% of HBM traffic).
    out = pl.pallas_call(
        kernel,
        out_shape=jax.ShapeDtypeStruct((B, N, D), self_vectors.dtype),
        grid_spec=pltpu.PrefetchScalarGridSpec(
            num_scalar_prefetch=0,
            grid=grid,
            in_specs=[
                pl.BlockSpec((1, tn, D), lambda b, n: (b, n, 0)),
                pl.BlockSpec((1, tn, K * D), lambda b, n: (b, n, 0)),
                pl.BlockSpec((1, tn, K * D), lambda b, n: (b, n, 0)),
                pl.BlockSpec((1, 1, D), lambda b, n: (b, 0, 0)),
                pl.BlockSpec((d_in, D), lambda b, n: (0, 0)),
                pl.BlockSpec((1, D), lambda b, n: (0, 0)),
            ],
            out_specs=pl.BlockSpec((1, tn, D), lambda b, n: (b, n, 0)),
        ),
        compiler_params=pltpu.CompilerParams(
            dimension_semantics=("parallel", "parallel"),
            vmem_limit_bytes=32 * 1024 * 1024),
    )(self_vectors, nvec, nrel, user3, weight, bias2)
    return out


def aggregator_reference(self_vectors, neighbor_vectors, neighbor_relations,
                         user_embeddings, weight, bias,
                         aggregator='sum', act=jax.nn.relu):
    """Pure-JAX reference mirroring the PyTorch forward exactly."""
    B, N, K, D = neighbor_vectors.shape
    u = user_embeddings.reshape(B, 1, 1, D)
    scores = jnp.sum(u * neighbor_relations, axis=-1)            # (B, N, K)
    p = jax.nn.softmax(scores, axis=-1)[..., None]               # (B, N, K, 1)
    agg = jnp.sum(p * neighbor_vectors, axis=2)                  # (B, N, D)
    if aggregator == 'sum':
        h = (self_vectors + agg).reshape(-1, D)
    elif aggregator == 'concat':
        h = jnp.concatenate([self_vectors, agg], axis=-1).reshape(-1, 2 * D)
    else:
        h = agg.reshape(-1, D)
    # Full-f32 matmul so the comparison against the kernel is at f32 accuracy.
    out = jnp.dot(h, weight, precision=jax.lax.Precision.HIGHEST) + bias
    return act(out).reshape(B, -1, D)


if __name__ == "__main__":
    B, N, K, D = 2, 8, 4, 32
    act = jax.nn.relu

    key = jax.random.PRNGKey(0)
    ks = jax.random.split(key, 8)
    self_vectors = jax.random.normal(ks[0], (B, N, D), dtype=jnp.float32)
    neighbor_vectors = jax.random.normal(ks[1], (B, N, K, D), dtype=jnp.float32)
    neighbor_relations = jax.random.normal(ks[2], (B, N, K, D), dtype=jnp.float32)
    user_embeddings = jax.random.normal(ks[3], (B, D), dtype=jnp.float32)

    for idx, aggregator in enumerate(('sum', 'concat', 'neighbor')):
        # Deterministic Linear(d_in -> D) parameters (torch.nn.Linear shapes).
        d_in = 2 * D if aggregator == 'concat' else D
        bound = 1.0 / np.sqrt(d_in)
        weight = jax.random.uniform(ks[4 + idx], (d_in, D), dtype=jnp.float32,
                                    minval=-bound, maxval=bound)
        bias = jax.random.uniform(ks[7], (D,), dtype=jnp.float32,
                                  minval=-bound, maxval=bound)

        out = aggregator_forward(self_vectors, neighbor_vectors,
                                 neighbor_relations, user_embeddings,
                                 weight, bias, aggregator=aggregator, act=act)
        out = jax.block_until_ready(out)

        ref = aggregator_reference(self_vectors, neighbor_vectors,
                                   neighbor_relations, user_embeddings,
                                   weight, bias, aggregator=aggregator, act=act)
        ref = jax.block_until_ready(ref)

        assert out.shape == (B, N, D), (aggregator, out.shape)
        # Exact softmax divide + HIGHEST-precision matmuls on both sides:
        # only reduce-order-level f32 differences remain.
        np.testing.assert_allclose(np.asarray(out), np.asarray(ref),
                                   rtol=1e-4, atol=1e-4,
                                   err_msg=f"mismatch for {aggregator}")

    print("KERNEL_OK")
</pallas_src>

<mosaic_0001>
module attributes {stable_mosaic.version = 11 : i64} {
  func.func @_aggregator_kernel(%arg0: i32, %arg1: i32, %arg2: memref<1x8x32xf32, #tpu.memory_space<vmem>>, %arg3: memref<1x8x128xf32, #tpu.memory_space<vmem>>, %arg4: memref<1x8x128xf32, #tpu.memory_space<vmem>>, %arg5: memref<1x1x32xf32, #tpu.memory_space<vmem>>, %arg6: memref<32x32xf32, #tpu.memory_space<vmem>>, %arg7: memref<1x32xf32, #tpu.memory_space<vmem>>, %arg8: memref<1x8x32xf32, #tpu.memory_space<vmem>>) attributes {dimension_semantics = [#tpu.dimension_semantics<parallel>, #tpu.dimension_semantics<parallel>], iteration_bounds = array<i64: 2, 1>, scalar_prefetch = 0 : i64, scratch_operands = 0 : i64, tpu.core_type = #tpu.core_type<tc>, window_params = [{transform_indices = @transform_0, window_bounds = array<i64: 1, 8, 32>}, {transform_indices = @transform_1, window_bounds = array<i64: 1, 8, 128>}, {transform_indices = @transform_2, window_bounds = array<i64: 1, 8, 128>}, {transform_indices = @transform_3, window_bounds = array<i64: 1, 1, 32>}, {pipeline_mode = #tpu.pipeline_mode<synchronous>, transform_indices = @transform_4, window_bounds = array<i64: 32, 32>}, {pipeline_mode = #tpu.pipeline_mode<synchronous>, transform_indices = @transform_5, window_bounds = array<i64: 1, 32>}, {transform_indices = @transform_6, window_bounds = array<i64: 1, 8, 32>}]} {
    %c0 = arith.constant 0 : index
    %c0_0 = arith.constant 0 : index
    %c0_1 = arith.constant 0 : index
    %0 = vector.load %arg2[%c0, %c0_0, %c0_1] : memref<1x8x32xf32, #tpu.memory_space<vmem>>, vector<1x8x32xf32>
    %1 = vector.shape_cast %0 : vector<1x8x32xf32> to vector<8x32xf32>
    %c0_2 = arith.constant 0 : index
    %c0_3 = arith.constant 0 : index
    %c0_4 = arith.constant 0 : index
    %2 = vector.load %arg3[%c0_2, %c0_3, %c0_4] : memref<1x8x128xf32, #tpu.memory_space<vmem>>, vector<1x8x128xf32>
    %3 = vector.shape_cast %2 : vector<1x8x128xf32> to vector<8x128xf32>
    %c0_5 = arith.constant 0 : index
    %c0_6 = arith.constant 0 : index
    %c0_7 = arith.constant 0 : index
    %4 = vector.load %arg4[%c0_5, %c0_6, %c0_7] : memref<1x8x128xf32, #tpu.memory_space<vmem>>, vector<1x8x128xf32>
    %5 = vector.shape_cast %4 : vector<1x8x128xf32> to vector<8x128xf32>
    %c0_8 = arith.constant 0 : index
    %c0_9 = arith.constant 0 : index
    %c0_10 = arith.constant 0 : index
    %6 = vector.load %arg5[%c0_8, %c0_9, %c0_10] : memref<1x1x32xf32, #tpu.memory_space<vmem>>, vector<1x1x32xf32>
    %7 = vector.shape_cast %6 : vector<1x1x32xf32> to vector<1x32xf32>
    %8 = vector.extract_strided_slice %5 {offsets = [0, 0], sizes = [8, 32], strides = [1, 1]} : vector<8x128xf32> to vector<8x32xf32>
    %9 = vector.broadcast %7 : vector<1x32xf32> to vector<8x32xf32>
    %10 = arith.mulf %8, %9 : vector<8x32xf32>
    %cst = arith.constant dense<0.000000e+00> : vector<8xf32>
    %11 = vector.multi_reduction <add>, %10, %cst [1] : vector<8x32xf32> to vector<8xf32>
    %12 = vector.shape_cast %11 : vector<8xf32> to vector<8x1xf32>
    %13 = vector.extract_strided_slice %5 {offsets = [0, 32], sizes = [8, 32], strides = [1, 1]} : vector<8x128xf32> to vector<8x32xf32>
    %14 = vector.broadcast %7 : vector<1x32xf32> to vector<8x32xf32>
    %15 = arith.mulf %13, %14 : vector<8x32xf32>
    %cst_11 = arith.constant dense<0.000000e+00> : vector<8xf32>
    %16 = vector.multi_reduction <add>, %15, %cst_11 [1] : vector<8x32xf32> to vector<8xf32>
    %17 = vector.shape_cast %16 : vector<8xf32> to vector<8x1xf32>
    %18 = vector.extract_strided_slice %5 {offsets = [0, 64], sizes = [8, 32], strides = [1, 1]} : vector<8x128xf32> to vector<8x32xf32>
    %19 = vector.broadcast %7 : vector<1x32xf32> to vector<8x32xf32>
    %20 = arith.mulf %18, %19 : vector<8x32xf32>
    %cst_12 = arith.constant dense<0.000000e+00> : vector<8xf32>
    %21 = vector.multi_reduction <add>, %20, %cst_12 [1] : vector<8x32xf32> to vector<8xf32>
    %22 = vector.shape_cast %21 : vector<8xf32> to vector<8x1xf32>
    %23 = vector.extract_strided_slice %5 {offsets = [0, 96], sizes = [8, 32], strides = [1, 1]} : vector<8x128xf32> to vector<8x32xf32>
    %24 = vector.broadcast %7 : vector<1x32xf32> to vector<8x32xf32>
    %25 = arith.mulf %23, %24 : vector<8x32xf32>
    %cst_13 = arith.constant dense<0.000000e+00> : vector<8xf32>
    %26 = vector.multi_reduction <add>, %25, %cst_13 [1] : vector<8x32xf32> to vector<8xf32>
    %27 = vector.shape_cast %26 : vector<8xf32> to vector<8x1xf32>
    %28 = arith.maximumf %12, %17 : vector<8x1xf32>
    %29 = arith.maximumf %28, %22 : vector<8x1xf32>
    %30 = arith.maximumf %29, %27 : vector<8x1xf32>
    %31 = arith.subf %12, %30 : vector<8x1xf32>
    %32 = math.exp %31 : vector<8x1xf32>
    %33 = arith.subf %17, %30 : vector<8x1xf32>
    %34 = math.exp %33 : vector<8x1xf32>
    %35 = arith.subf %22, %30 : vector<8x1xf32>
    %36 = math.exp %35 : vector<8x1xf32>
    %37 = arith.subf %27, %30 : vector<8x1xf32>
    %38 = math.exp %37 : vector<8x1xf32>
    %39 = arith.addf %32, %34 : vector<8x1xf32>
    %40 = arith.addf %39, %36 : vector<8x1xf32>
    %41 = arith.addf %40, %38 : vector<8x1xf32>
    %cst_14 = arith.constant 1.000000e+00 : f32
    %42 = vector.broadcast %cst_14 : f32 to vector<8x1xf32>
    %43 = arith.divf %42, %41 : vector<8x1xf32>
    %44 = arith.mulf %32, %43 : vector<8x1xf32>
    %45 = vector.extract_strided_slice %3 {offsets = [0, 0], sizes = [8, 32], strides = [1, 1]} : vector<8x128xf32> to vector<8x32xf32>
    %46 = vector.broadcast %44 : vector<8x1xf32> to vector<8x32xf32>
    %47 = arith.mulf %46, %45 : vector<8x32xf32>
    %48 = arith.mulf %34, %43 : vector<8x1xf32>
    %49 = vector.extract_strided_slice %3 {offsets = [0, 32], sizes = [8, 32], strides = [1, 1]} : vector<8x128xf32> to vector<8x32xf32>
    %50 = vector.broadcast %48 : vector<8x1xf32> to vector<8x32xf32>
    %51 = arith.mulf %50, %49 : vector<8x32xf32>
    %52 = arith.addf %47, %51 : vector<8x32xf32>
    %53 = arith.mulf %36, %43 : vector<8x1xf32>
    %54 = vector.extract_strided_slice %3 {offsets = [0, 64], sizes = [8, 32], strides = [1, 1]} : vector<8x128xf32> to vector<8x32xf32>
    %55 = vector.broadcast %53 : vector<8x1xf32> to vector<8x32xf32>
    %56 = arith.mulf %55, %54 : vector<8x32xf32>
    %57 = arith.addf %52, %56 : vector<8x32xf32>
    %58 = arith.mulf %38, %43 : vector<8x1xf32>
    %59 = vector.extract_strided_slice %3 {offsets = [0, 96], sizes = [8, 32], strides = [1, 1]} : vector<8x128xf32> to vector<8x32xf32>
    %60 = vector.broadcast %58 : vector<8x1xf32> to vector<8x32xf32>
    %61 = arith.mulf %60, %59 : vector<8x32xf32>
    %62 = arith.addf %57, %61 : vector<8x32xf32>
    %c0_15 = arith.constant 0 : index
    %c0_16 = arith.constant 0 : index
    %63 = vector.load %arg6[%c0_15, %c0_16] : memref<32x32xf32, #tpu.memory_space<vmem>>, vector<32x32xf32>
    %64 = arith.addf %1, %62 : vector<8x32xf32>
    %cst_17 = arith.constant dense<0.000000e+00> : vector<8x32xf32>
    %65 = tpu.matmul %64, %63, %cst_17 {dimension_numbers = #tpu.dot_dimension_numbers<[1], [0], [0], [1], [0, 0, 1, 1], [], []>, precision = #tpu.contract_precision<fp32>} : vector<8x32xf32>, vector<32x32xf32>, vector<8x32xf32> -> vector<8x32xf32>
    %c0_18 = arith.constant 0 : index
    %c0_19 = arith.constant 0 : index
    %66 = vector.load %arg7[%c0_18, %c0_19] : memref<1x32xf32, #tpu.memory_space<vmem>>, vector<1x32xf32>
    %67 = vector.broadcast %66 : vector<1x32xf32> to vector<8x32xf32>
    %68 = arith.addf %65, %67 : vector<8x32xf32>
    %cst_20 = arith.constant 0.000000e+00 : f32
    %69 = vector.broadcast %cst_20 : f32 to vector<8x32xf32>
    %70 = arith.maximumf %68, %69 : vector<8x32xf32>
    %c0_21 = arith.constant 0 : index
    %c0_22 = arith.constant 0 : index
    %c0_23 = arith.constant 0 : index
    %71 = vector.load %arg8[%c0_21, %c0_22, %c0_23] : memref<1x8x32xf32, #tpu.memory_space<vmem>>, vector<1x8x32xf32>
    %72 = vector.shape_cast %71 : vector<1x8x32xf32> to vector<8x32xf32>
    %73 = vector.shape_cast %70 : vector<8x32xf32> to vector<1x8x32xf32>
    tpu.vector_store %arg8[%c0_21, %c0_22, %c0_23], %73 {strides = array<i32>} : memref<1x8x32xf32, #tpu.memory_space<vmem>>, vector<1x8x32xf32>,
    return
  }
  func.func @transform_0(%arg0: i32, %arg1: i32) -> (i32, i32, i32) {
    %c0_i32 = arith.constant 0 : i32
    %c0_i32_0 = arith.constant 0 : i32
    return %arg0, %arg1, %c0_i32 : i32, i32, i32
  }
  func.func @transform_1(%arg0: i32, %arg1: i32) -> (i32, i32, i32) {
    %c0_i32 = arith.constant 0 : i32
    %c0_i32_0 = arith.constant 0 : i32
    return %arg0, %arg1, %c0_i32 : i32, i32, i32
  }
  func.func @transform_2(%arg0: i32, %arg1: i32) -> (i32, i32, i32) {
    %c0_i32 = arith.constant 0 : i32
    %c0_i32_0 = arith.constant 0 : i32
    return %arg0, %arg1, %c0_i32 : i32, i32, i32
  }
  func.func @transform_3(%arg0: i32, %arg1: i32) -> (i32, i32, i32) {
    %c0_i32 = arith.constant 0 : i32
    %c0_i32_0 = arith.constant 0 : i32
    %c0_i32_1 = arith.constant 0 : i32
    return %arg0, %c0_i32, %c0_i32_0 : i32, i32, i32
  }
  func.func @transform_4(%arg0: i32, %arg1: i32) -> (i32, i32) {
    %c0_i32 = arith.constant 0 : i32
    %c0_i32_0 = arith.constant 0 : i32
    %c0_i32_1 = arith.constant 0 : i32
    return %c0_i32, %c0_i32_0 : i32, i32
  }
  func.func @transform_5(%arg0: i32, %arg1: i32) -> (i32, i32) {
    %c0_i32 = arith.constant 0 : i32
    %c0_i32_0 = arith.constant 0 : i32
    %c0_i32_1 = arith.constant 0 : i32
    return %c0_i32, %c0_i32_0 : i32, i32
  }
  func.func @transform_6(%arg0: i32, %arg1: i32) -> (i32, i32, i32) {
    %c0_i32 = arith.constant 0 : i32
    %c0_i32_0 = arith.constant 0 : i32
    return %arg0, %arg1, %c0_i32 : i32, i32, i32
  }
}

</mosaic_0001>

<bundles_post_ra>
// kernel: tpu_custom_call.1
= control target key start
LH: loop header
LB: loop body
LE: loop exit
PB: predicated region body
PF: predicated region fallthrough
CT: control target
= control target key end

     0   :  { %s1455_s0 = inlined_call_operand.hbm [shape: f32[2,8,32], index: 0, kind: input, shape index: {}]   ;;  %s1456_s1 = inlined_call_operand.hbm [shape: f32[2,8,128], index: 1, kind: input, shape index: {}]   ;;  %s1457_s2 = inlined_call_operand.hbm [shape: f32[2,8,128], index: 2, kind: input, shape index: {}]   ;;  %s1458_s3 = inlined_call_operand.vmem [shape: f32[2,1,32], index: 3, kind: input, shape index: {}]   ;;  %s1459_s4 = inlined_call_operand.hbm [shape: f32[32,32], index: 4, kind: input, shape index: {}]   ;;  %s1460_s5 = inlined_call_operand.vmem [shape: f32[1,32], index: 5, kind: input, shape index: {}]   ;;  %s1461_s6 = inlined_call_operand.hbm [shape: f32[2,8,32], index: 6, kind: output, shape index: {}]  }
   0x1   :  { %1469 = sst [smem:[#allocation21_spill]] %s1456_s1 }
   0x2   :  { %1470 = sst [smem:[#allocation22_spill]] %s1459_s4 }
   0x3   :  { %11 = vsyncpa [#allocation3], 0 }
   0x4   :  { %13 = vsyncpa [#allocation3 + $0x1], 0 }
   0x5   :  { %14 = vsyncpa [#allocation6], 0 }
   0x6   :  { %16 = vsyncpa [#allocation6 + $0x1], 0 }
   0x7   :  { %17 = vsyncpa [#allocation9], 0 }
   0x8   :  { %18 = vsyncpa [#allocation4], 0 }
   0x9   :  { %20 = vsyncpa [#allocation4 + $0x1], 0  ;;  %s1233_s21 = smov 0   ;;  %s1235_s22 = smov 0  }
   0xa   :  { %s1237_s23 = smov 0   ;;  %s1239_s24 = smov 0  }
   0xb   :  { %s1241_s25 = smov 0   ;;  %s1243_s26 = smov 0  }
   0xc LB: > { %1471 = sst [smem:[#allocation15_spill]] %s1170_s21  ;;  %s1264_s27 = sadd.s32 4294967295, %s1190_s26   ;;  %s1190_s26 = sphi %s1243_s26, %s26_s26   ;;  %s1186_s25 = sphi %s1241_s25, %s1491_s25   ;;  %s1182_s24 = sphi %s1239_s24, %s1490_s24   ;;  %s1178_s23 = sphi %s1237_s23, %s1494_s23   ;;  %s1174_s22 = sphi %s1235_s22, %s1493_s22   ;;  %s1170_s21 = sphi %s1233_s21, %s1492_s21  }
   0xd   : > { %1472 = sst [smem:[#allocation16_spill]] %s1186_s25  ;;  %s860_s28 = sadd.s32 4294967294, %s1190_s26  }
   0xe   : > { %1473 = sst [smem:[#allocation17_spill]] %s1190_s26  ;;  %s38_s29 = sadd.s32 1, %s1186_s25 }
   0xf   : > { %s47_s30 = sadd.s32 1, %s1178_s23  ;;  %p40_p0 = scmp.ge.s32.totalorder %s38_s29, 2 }
  0x10   : > { %p54_p1 = scmp.ne.s32.totalorder %s1178_s23, %s1174_s22  ;;  %p55_p2 = scmp.eq.s32.totalorder %s1190_s26, 0 }
  0x11   : > { %p60_p3 = scmp.ne.s32.totalorder %s1174_s22, %s1170_s21  ;;  %s1496_s29 = smov (%p40_p0, %s38_s29), 0 }
  0x12   : > { %1474 = sst [smem:[#allocation18_spill]] %s1496_s29  ;;  %p1276_p4 = por %p55_p2, %p54_p1 }
  0x13   : > { %p210_p5 = scmp.eq.s32.totalorder %s1264_s27, 1  ;;  %s42_s8 = ssub.s32 %s1186_s25, %s1496_s29 }
  0x14   : > { %p216_p6 = scmp.eq.s32.totalorder %s860_s28, 1  ;;  %p45_p7 = scmp.eq.s32.totalorder %s42_s8, 0 }
  0x15   : > { %p1283_p8 = por %p210_p5, %p54_p1  ;;  %p863_p10 = scmp.ge.s32.totalorder %s1190_s26, 2 }
  0x16   : > { %p1290_p9 = por %p216_p6, %p60_p3  ;;  %p911_p11 = scmp.lt.s32.totalorder %s1190_s26, 2 }
  0x17   : > { %s1295_s11 = scalar_select %p45_p7, %s1178_s23, %s47_s30  }
  0x18   : > { %s1477_s10 = scalar_select %p1290_p9, 1, 0 }
  0x19   : > { %1479 = sst [smem:[#allocation20_spill]] %s1295_s11  ;;  %s1462_s12 = sand.u32 1, %s1178_s23  }
  0x1a   : > { %1478 = sst [smem:[#allocation19_spill]] %s1477_s10  ;;  %s1301_s13 = sshll.u32 %s1186_s25, 3 }
  0x1b   : > { %s1305_s14 = sshll.u32 %s1462_s12, 3  ;;  %p1309_p12 = pnand %p911_p11, %p1276_p4 }
  0x1c   : > { %s273_s16 = sand.u32 1, %s1190_s26   ;;  %s1481_s1 = sld [smem:[#allocation21_spill]] }
  0x1d   : > { %s277_s20 = scalar_lea.vmem [#allocation5], %s1305_s14  ;;  %s1319_s8 = scalar_lea.sflag [#allocation6], %s273_s16 }
  0x1e   : > { %s286_s28 = sshll.u32 %s277_s20, 4  ;;  %p61_p13 = scmp.eq.s32.totalorder %s1264_s27, 0  ;;  %s287_s28 = int_to_ptr.vmem [resolvable:$true] %s286_s28 }
  0x1f   : > { %p861_p0 = scmp.ge.s32.totalorder %s1190_s26, 1  ;;  %p223_p1 = scmp.lt.s32.totalorder %s1190_s26, 3 }
  0x20   : > { %p1332_p2 = por %p61_p13, %p60_p3  ;;  %s1483_s4 = sld [smem:[#allocation22_spill]] }
  0x21   : > { %p1339_p4 = pnand %p861_p0, %p223_p1  ;;  %s1192_s20 = smov [#allocation8]  }
  0x22   : > { %s282_s19 = scalar_lea.hbm %s1481_s1, %s1301_s13  ;;  %s262_s18 = scalar_lea.hbm %s1455_s0, %s1301_s13 }
  0x23   : > { %s284_s30 = sshll.u32 %s282_s19, 4  ;;  %p892_p5 = pneg %p1339_p4  ;;  %s285_s30 = int_to_ptr.hbm [resolvable:$true] %s284_s30 }
  0x24   : > { %902 = dma.hbm_to_vmem [thread:$0]  (!%p1309_p12), %s285_s30, 128, %s287_s28, %s1319_s8  }
  0x25   : > { %s236_s28 = sshll.u32 %s1192_s20, 4  ;;  %p893_p3 = pnand %p892_p5, %p61_p13  ;;  %s237_s28 = int_to_ptr.vmem [resolvable:$true] %s236_s28 }
  0x26   : > { %s234_s19 = sshll.u32 %s1483_s4, 4  ;;  %s264_s12 = sshll.u32 %s262_s18, 4  ;;  %s235_s19 = int_to_ptr.hbm [resolvable:$true] %s234_s19  ;;  %s265_s12 = int_to_ptr.hbm [resolvable:$true] %s264_s12 }
  0x27   : > { %s1193_s1 = smov 128   ;;  %s1194_s4 = smov 8  }
  0x28   : > { %895 = dma.hbm_to_vmem [thread:$0]  (!%p893_p3), %s235_s19, 512, %s237_s28, [#allocation9], %s1193_s1, %s1193_s1, %s1194_s4  }
  0x29   : > { %s257_s29 = scalar_lea.vmem [#allocation2], %s1305_s14  ;;  %s1485_s11 = sand.u32 1, %s1178_s23  }
  0x2a   : > { %s266_s25 = sshll.u32 %s257_s29, 4  ;;  %s254_s26 = scalar_lea.sflag [#allocation3], %s1485_s11  ;;  %s267_s25 = int_to_ptr.vmem [resolvable:$true] %s266_s25 }
  0x2b   : > { %899 = dma.hbm_to_vmem [thread:$0]  (!%p1309_p12), %s265_s12, 128, %s267_s25, %s254_s26  }
  0x2c   : > { %s302_s21 = scalar_lea.hbm %s1457_s2, %s1301_s13  ;;  %s297_s30 = scalar_lea.vmem [#allocation7], %s1305_s14 }
  0x2d   : > { %s306_s17 = sshll.u32 %s297_s30, 4  ;;  %s304_s18 = sshll.u32 %s302_s21, 4  ;;  %s307_s17 = int_to_ptr.vmem [resolvable:$true] %s306_s17  ;;  %s305_s18 = int_to_ptr.hbm [resolvable:$true] %s304_s18 }
  0x2e   : > { %905 = dma.hbm_to_vmem [thread:$0]  (!%p1309_p12), %s305_s18, 128, %s307_s17, %s1319_s8  }
  0x2f   : > { %321 = sbr.rel (%p1339_p4) target bundleno = 736 (0x2e0), region = 44  ;;  %s1367_s1 = sand.u32 (!%p1339_p4), 1, %s1174_s22  }
  0x30   : > { %s1370_s4 = sshll.u32 (!%p1339_p4), %s1367_s1, 3  ;;  %s324_s25 = scalar_lea.sflag (!%p1339_p4), [#allocation3], %s1367_s1 }
  0x31   : > { %s327_s26 = scalar_lea.vmem (!%p1339_p4), [#allocation2], %s1370_s4 }
  0x34   : > { %1153 = dma.done.wait (%p1332_p2), %s324_s25, 128  }
  0x35   : > { %1155 = vsyncadd (%p1332_p2), %s324_s25, 4294967168  ;;  %s333_s21 = sand.u32 1, %s1264_s27   ;;  %s337_s10 = scalar_lea.vmem [#allocation5], %s1370_s4 }
  0x36   : > { %s334_s29 = scalar_lea.sflag [#allocation6], %s333_s21 }
  0x37   : > { %1157 = dma.done.wait (%p1332_p2), %s334_s29, 256  }
  0x38   : > { %1159 = vsyncadd (%p1332_p2), %s334_s29, 4294967040  ;;  %s347_s11 = scalar_lea.vmem [#allocation7], %s1370_s4 }
  0x39   : > { %1161 = dma.done.wait (%p61_p13), [#allocation9], 512  }
  0x3a   : > { %1163 = vsyncadd (%p61_p13), [#allocation9], 4294966784  ;;  %p395_p6 = scmp.lt.s32.totalorder %s1182_s24, 1  ;;  %s1195_s8 = smov 32   ;;  %v400_v1 = vld [vmem:[%s347_s11] sm:$0xff]  ;;  %vm406_vm0 = vcmask 261120  }
  0x3b   : > { %s1196_s7 = smov 96   ;;  %s1197_s19 = smov 64   ;;  %v399_v47 = vld [vmem:[%s337_s10] sm:$0xff]  ;;  %v502_v57 = vld [vmem:[#allocation8 + $0x18] sm:$0xff]  ;;  %v501_v59 = vld [vmem:[#allocation8 + $0x10] sm:$0xff] }
  0x3c   : > { %s396_s12 = scalar_select %p395_p6, %s1182_s24, 1  ;;  %v523_v58 = vand.u32 4294901760, %v502_v57  ;;  %v525_v61 = vand.u32 4294901760, %v501_v59  ;;  %v500_v62 = vld [vmem:[#allocation8 + $0x8] sm:$0xff] }
  0x3d   : > { %s877_s28 = sshll.u32 %s1182_s24, 3  ;;  %s394_s18 = scalar_lea.vmem [#allocation10], %s1370_s4 }
  0x3e   : > { %s397_s15 = scalar_lea.vmem %s1458_s3, %s396_s12  ;;  %v553_v60 = vsub.f32 %v502_v57, %v523_v58  ;;  %624 = vmatpush.msra.mxu3 %v523_v58  ;;  %524 = vmatpush.msra.mxu0 %v523_v58  ;;  %s710_s17 = scalar_lea.hbm %s1461_s6, %s877_s28 }
  0x3f   : > { %v968_v0 = vld [vmem:[%s397_s15] ss:$0 sm:$0xff]  ;;  %s712_s25 = sshll.u32 %s394_s18, 4  ;;  %s699_s24 = scalar_lea.sflag [#allocation4], %s1367_s1  ;;  %s713_s25 = int_to_ptr.vmem [resolvable:$true] %s712_s25 }
  0x40   : > { %410 = vrot.lane.b32.xlu0 %v968_v0, %s1195_s8  ;;  %432 = vrot.lane.b32.xlu1 %v968_v0, %s1196_s7  ;;  %v405_v8 = vmul.f32 %v968_v0, %v400_v1  ;;  %v554_v63 = vand.u32 4294901760, %v553_v60  ;;  %s1120_s4 = scalar_lea.hbm %s1461_s6, 16 }
  0x41   : > { %595 = vmatpush.msra.mxu2 %v553_v60  ;;  %626 = vmatpush.msra.mxu3 %v525_v61 }
  0x42   : > { %v407_v9 = vsel %vm406_vm0, %v405_v8, 0.0  ;;  %526 = vmatpush.msra.mxu0 %v525_v61 }
  0x48   : > { %421 = vrot.lane.b32.xlu0 %v968_v0, %s1197_s19  ;;  %v559_v0 = vsub.f32 %v501_v59, %v525_v61 }
  0x4a   : > { %598 = vmatpush.msra.mxu2 %v559_v0 }
  0x72   : > { %408 = vadd.xlane.f32.xlu0 %v407_v9 }
  0xb2   : > { %v411_v2 = vpop.permute.xlu0 %410  ;;  %v433_v6 = vpop.permute.xlu1 %432 }
  0xb3   : > { %v413_v3 = vmul.f32 %v411_v2, %v400_v1  ;;  %v435_v7 = vmul.f32 %v433_v6, %v400_v1  ;;  %v499_v2 = vld [vmem:[#allocation8] sm:$0xff] }
  0xb4   : > { %v529_v6 = vand.u32 4294901760, %v499_v2 }
  0xb5   : > { %415 = vrot.lane.b32.xlu1 %v413_v3, %s1196_s7  ;;  %v555_v3 = vsub.f32 %v553_v60, %v554_v63 }
  0xba   : > { %v422_v4 = vpop.permute.xlu0 %421 }
  0xbb   : > { %v424_v5 = vmul.f32 %v422_v4, %v400_v1  ;;  %v527_v1 = vand.u32 4294901760, %v500_v62  ;;  %v560_v4 = vand.u32 4294901760, %v559_v0 }
  0xbd   : > { %426 = vrot.lane.b32.xlu2 %v424_v5, %s1197_s19  ;;  %v565_v5 = vsub.f32 %v500_v62, %v527_v1  ;;  %628 = vmatpush.msra.mxu3 %v527_v1  ;;  %v561_v8 = vsub.f32 %v559_v0, %v560_v4 }
  0xbe   : > { %528 = vmatpush.msra.mxu0 %v527_v1 }
  0xbf   : > { %v566_v9 = vand.u32 4294901760, %v565_v5  ;;  %601 = vmatpush.msra.mxu2 %v565_v5  ;;  %630 = vmatpush.msra.mxu3 %v529_v6 }
  0xc0   : > { %530 = vmatpush.msra.mxu0 %v529_v6 }
  0xc2   : > { %653 = vmatpush.msrb.mxu0 %v554_v63 }
  0xc4   : > { %657 = vmatpush.msrb.mxu0 %v560_v4 }
  0xc5   : > { %437 = vrot.lane.b32.xlu2 %v435_v7, %s1195_s8  ;;  %v556_v7 = vand.u32 4294901760, %v555_v3 }
  0xc6   : > { %661 = vmatpush.msrb.mxu0 %v566_v9 }
  0xc7   : > { %557 = vmatpush.msra.mxu1 %v556_v7 }
  0xe5   : > { %v409_v17 = vpop.xlane.xlu0 %408 }
 0x117   : > { %v427_v10 = vpop.permute.xlu2 %426 }
 0x118   : > { %v429_v11 = vsel %vm406_vm0, %v427_v10, 0.0  ;;  %v571_v10 = vsub.f32 %v499_v2, %v529_v6 }
 0x119   : > { %430 = vadd.xlane.f32.xlu2 %v429_v11  ;;  %v562_v11 = vand.u32 4294901760, %v561_v8 }
 0x11a   : > { %604 = vmatpush.msra.mxu2 %v571_v10 }
 0x11b   : > { %563 = vmatpush.msra.mxu1 %v562_v11 }
 0x11f   : > { %v438_v12 = vpop.permute.xlu2 %437 }
 0x120   : > { %v440_v13 = vsel %vm406_vm0, %v438_v12, 0.0  ;;  %v567_v12 = vsub.f32 %v565_v5, %v566_v9 }
 0x121   : > { %441 = vadd.xlane.f32.xlu2 %v440_v13  ;;  %v572_v13 = vand.u32 4294901760, %v571_v10 }
 0x123   : > { %665 = vmatpush.msrb.mxu0 %v572_v13 }
 0x127   : > { %v416_v14 = vpop.permute.xlu1 %415 }
 0x128   : > { %v418_v15 = vsel %vm406_vm0, %v416_v14, 0.0  ;;  %v568_v14 = vand.u32 4294901760, %v567_v12 }
 0x129   : > { %419 = vadd.xlane.f32.xlu1 %v418_v15  ;;  %v573_v15 = vsub.f32 %v571_v10, %v572_v13 }
 0x12a   : > { %569 = vmatpush.msra.mxu1 %v568_v14 }
 0x18c   : > { %v431_v16 = vpop.xlane.xlu2 %430 }
 0x194   : > { %v442_v20 = vpop.xlane.xlu2 %441 }
 0x19c   : > { %v420_v18 = vpop.xlane.xlu1 %419 }
 0x19d   : > { %v443_v19 = vmax.f32 %v409_v17, %v420_v18 }
 0x19f   : > { %v444_v21 = vmax.f32 %v443_v19, %v431_v16 }
 0x1a1   : > { %v445_v22 = vmax.f32 %v444_v21, %v442_v20 }
 0x1a3   : > { %v446_v23 = vsub.f32 %v409_v17, %v445_v22  ;;  %v449_v24 = vsub.f32 %v420_v18, %v445_v22  ;;  %v452_v25 = vsub.f32 %v431_v16, %v445_v22  ;;  %v455_v26 = vsub.f32 %v442_v20, %v445_v22  ;;  %v398_v22 = vld [vmem:[%s327_s26] sm:$0xff]  ;;  %s714_s26 = sshll.u32 %s710_s17, 4  ;;  %s715_s26 = int_to_ptr.hbm [resolvable:$true] %s714_s26 }
 0x1a4   : > { %v574_v16 = vand.u32 4294901760, %v573_v15  ;;  %s1114_s21 = sshra.s32 %s715_s26, 4  ;;  %s1115_s21 = int_to_ptr.hbm [resolvable:$true] %s1114_s21 }
 0x1a5   : > { %v447_v27 = vmul.f32 1.442695, %v446_v23  ;;  %v450_v28 = vmul.f32 1.442695, %v449_v24  ;;  %v453_v29 = vmul.f32 1.442695, %v452_v25  ;;  %p1121_p13 = scmp.lt.s32.totalorder %s1115_s21, %s1461_s6 }
 0x1a6   : > { %v456_v30 = vmul.f32 1.442695, %v455_v26  ;;  %575 = vmatpush.msra.mxu1 %v574_v16  ;;  %s1116_s29 = scalar_lea.hbm %s1115_s21, 8 }
 0x1a7   : > { %970 = vpow2.f32 %v447_v27  ;;  %p1117_p7 = scmp.ne.s32.totalorder %s1115_s21, %s1116_s29  ;;  %p1122_p0 = scmp.lt.s32.totalorder %s1120_s4, %s1116_s29 }
 0x1a8   : > { %972 = vpow2.f32 %v450_v28  ;;  %684 = vmatpush.msrb.mxu1 %v523_v58 }
 0x1a9   : > { %974 = vpow2.f32 %v453_v29  ;;  %p1118_p11 = pnand %p1117_p7, %p1283_p8  ;;  %p1123_p1 = por %p1122_p0, %p1121_p13 }
 0x1aa   : > { %976 = vpow2.f32 %v456_v30  ;;  %686 = vmatpush.msrb.mxu1 %v525_v61 }
 0x1ab   : > { %p1119_p12 = pneg %p1118_p11 }
 0x1ac   : > { %688 = vmatpush.msrb.mxu1 %v527_v1 }
 0x1ad   : > { %v971_v31 = vpop.eup %970  ;;  %p1124_p2 = pnand %p1123_p1, %p1119_p12 }
 0x1ae   : > { %v973_v32 = vpop.eup %972  ;;  %690 = vmatpush.msrb.mxu1 %v529_v6 }
 0x1af   : > { %v458_v33 = vadd.f32 %v973_v32, %v971_v31  ;;  %v975_v34 = vpop.eup %974 }
 0x1b0   : > { %v977_v36 = vpop.eup %976 }
 0x1b1   : > { %v459_v35 = vadd.f32 %v975_v34, %v458_v33 }
 0x1b3   : > { %v460_v37 = vadd.f32 %v977_v36, %v459_v35 }
 0x1b5   : > { %978 = vrcp.f32 %v460_v37  ;;  %v472_v41 = vand.u32 2147483648, %v460_v37  ;;  %v470_v43 = vand.u32 2147483647, %v460_v37  ;;  %vm466_vm2 = vweird.f32 %v460_v37 }
 0x1b7   : > { %v473_v45 = vor.u32 1.1754944e-38, %v472_v41  ;;  %vm471_vm4 = vcmp.eq.f32.partialorder %v470_v43, 8.507059e+37 }
 0x1bb   : > { %v979_v38 = vpop.eup %978 }
 0x1bc   : > { %v462_v39 = vmul.f32 %v979_v38, %v460_v37  ;;  %vm467_vm1 = vweird.f32 %v979_v38 }
 0x1bd   : > { %vm468_vm3 = vmor %vm466_vm2, %vm467_vm1 }
 0x1be   : > { %v463_v40 = vsub.f32 1.0, %v462_v39 }
 0x1c0   : > { %v464_v42 = vmul.f32 %v979_v38, %v463_v40 }
 0x1c2   : > { %v465_v44 = vadd.f32 %v979_v38, %v464_v42 }
 0x1c4   : > { %v469_v46 = vsel %vm468_vm3, %v979_v38, %v465_v44 }
 0x1c5   : > { %v474_v48 = vsel %vm471_vm4, %v473_v45, %v469_v46 }
 0x1c6   : > { %v492_v49 = vmul.f32 %v977_v36, %v474_v48  ;;  %v485_v50 = vmul.f32 %v975_v34, %v474_v48  ;;  %v478_v51 = vmul.f32 %v973_v32, %v474_v48  ;;  %v476_v52 = vmul.f32 %v971_v31, %v474_v48  ;;  %v969_v31 = vld [vmem:[%s1460_s5] ss:$0 sm:$0xff] }
 0x1c8   : > { %v493_v53 = vmul.f32 %v492_v49, %v399_v47  ;;  %v486_v54 = vmul.f32 %v485_v50, %v399_v47  ;;  %v479_v55 = vmul.f32 %v478_v51, %v399_v47  ;;  %v477_v56 = vmul.f32 %v476_v52, %v399_v47 }
 0x1ca   : > { %495 = vrot.lane.b32.xlu2 %v493_v53, %s1195_s8  ;;  %488 = vrot.lane.b32.xlu1 %v486_v54, %s1197_s19 }
 0x1cb   : > { %481 = vrot.lane.b32.xlu0 %v479_v55, %s1196_s7 }
 0x224   : > { %v496_v21 = vpop.permute.xlu2 %495 }
 0x23c   : > { %v489_v19 = vpop.permute.xlu1 %488 }
 0x23d   : > { %v482_v17 = vpop.permute.xlu0 %481 }
 0x23e   : > { %v484_v18 = vadd.f32 %v482_v17, %v477_v56 }
 0x240   : > { %v491_v20 = vadd.f32 %v489_v19, %v484_v18 }
 0x242   : > { %v498_v23 = vadd.f32 %v496_v21, %v491_v20 }
 0x244   : > { %v503_v24 = vadd.f32 %v498_v23, %v398_v22 }
 0x246   : > { %v509_v25 = vsel %vm406_vm0, %v503_v24, 0 }
 0x247   : > { %v531_v26 = vand.u32 4294901760, %v509_v25 }
 0x249   : > { %577 = vmatmul.f32.vlgmr.msra.gmra.mxu1 %v531_v26  ;;  %v532_v27 = vsub.f32 %v509_v25, %v531_v26 }
 0x24b   : > { %607 = vmatmul.f32.vlgmr.msra.gmra.mxu2 %v532_v27  ;;  %v533_v28 = vand.u32 4294901760, %v532_v27 }
 0x24d   : > { %634 = vmatmul.f32.vlgmr.msra.gmra.mxu3 %v533_v28  ;;  %v534_v29 = vsub.f32 %v532_v27, %v533_v28 }
 0x24f   : > { %v535_v30 = vand.u32 4294901760, %v534_v29 }
 0x251   : > { %536 = vmatmul.f32.vlgmr.msra.gmra.mxu0 %v535_v30  ;;  %692 = vmatmul.f32.vlgmr.msrb.gmra.mxu1 %v531_v26 }
 0x259   : > { %667 = vmatmul.f32.vlgmr.msrb.gmra.mxu0 %v531_v26 }
 0x2c6   : > { %v578_v32 = vpop.f32.mrf.mxu1 }
 0x2ce   : > { %v537_v33 = vpop.f32.mrf.mxu0  ;;  %v608_v36 = vpop.f32.mrf.mxu2 }
 0x2cf   : > { %v538_v34 = vadd.f32 %v969_v31, %v537_v33  ;;  %v693_v42 = vpop.f32.mrf.mxu1 }
 0x2d0   : > { %v635_v38 = vpop.f32.mrf.mxu3 }
 0x2d1   : > { %v579_v35 = vadd.f32 %v578_v32, %v538_v34 }
 0x2d3   : > { %v609_v37 = vadd.f32 %v608_v36, %v579_v35 }
 0x2d5   : > { %v636_v39 = vadd.f32 %v635_v38, %v609_v37 }
 0x2d6   : > { %v668_v40 = vpop.f32.mrf.mxu0 }
 0x2d7   : > { %v669_v41 = vadd.f32 %v668_v40, %v636_v39 }
 0x2d9   : > { %v694_v43 = vadd.f32 %v693_v42, %v669_v41 }
 0x2db   : > { %v696_v44 = vmax.f32 %v694_v43, 0.0 }
 0x2dd   : > { %697 = vst.msk [vmem:[%s394_s18] sm:$0xff] %vm406_vm0, %v696_v44 }
 0x2de   : > { %1127 = shalt.err (!%p1124_p2)
}
 0x2df   : > { %890 = dma.vmem_to_hbm [thread:$0]  (%p1283_p8), %s713_s25, 128, %s715_s26, %s699_s24  }
 0x2e0 PF: > { %s1486_s1 = sld [smem:[#allocation15_spill]]  ;;  %p907_p4 = pnand %p863_p10, %p1290_p9 }
 0x2e1   : > { %s1488_s15 = sld [smem:[#allocation17_spill]] }
 0x2e2   : > { %p908_p5 = pneg %p907_p4 }
 0x2e6   : > { %s726_s8 = sand.u32 1, %s1486_s1  }
 0x2e7   : > { %s727_s7 = scalar_lea.sflag [#allocation4], %s726_s8 }
 0x2e8   : > { %1165 = dma.done.wait (%p908_p5), %s727_s7, 128  }
 0x2e9   : > { %1167 = vsyncadd (%p908_p5), %s727_s7, 4294967168  ;;  %s26_s26 = sadd.s32 1, %s1488_s15   ;;  %s1489_s19 = sld [smem:[#allocation20_spill]] }
 0x2ea   : > { %p23_p3 = scmp.ge.s32.totalorder %s26_s26, 4   ;;  %s1490_s24 = sld [smem:[#allocation16_spill]] }
 0x2eb   : > { %s1491_s25 = sld [smem:[#allocation18_spill]]  ;;  %s1492_s21 = smov %s1174_s22 }
 0x2ec   : > { %s1493_s22 = smov %s1178_s23  ;;  %25 = sbr.rel (!%p23_p3) target bundleno = 12 (0xc), region = 120 }
 0x2ef   : > { %s1494_s23 = smov %s1489_s19 }
 0x2f1   :  { %733 = vsyncpa [#allocation3], 1 }
 0x2f2   :  { %735 = vsyncpa [#allocation3 + $0x1], 1 }
 0x2f3   :  { %736 = vsyncpa [#allocation6], 1 }
 0x2f4   :  { %738 = vsyncpa [#allocation6 + $0x1], 1 }
 0x2f5   :  { %739 = vsyncpa [#allocation9], 1 }
 0x2f6   :  { %740 = vsyncpa [#allocation4], 1 }
 0x2f7   :  { %742 = vsyncpa [#allocation4 + $0x1], 1 }

</bundles_post_ra>
